<compile_context>
chip_gen: v7x
topology: tpu7x:2x2x1
jax: 0.10.0
libtpu: 0.0.40
codegen_flags: <defaults>
</compile_context>

<pallas_src>
import math

import jax
import jax.numpy as jnp
import numpy as np
from jax.experimental import pallas as pl
from jax.experimental.pallas import tpu as pltpu


def _pe_kernel(const_ref, o_ref):
    """Fill one (TR, L) tile of the folded positional-encoding table.

    const_ref: (3, L) resident column constants
        row 0: fold * inv_freq   (per-lane frequency, pre-scaled by fold)
        row 1: sub  * inv_freq   (phase contribution of the in-fold offset)
        row 2: 1.0 on odd (cos) columns, 0.0 on even (sin) columns
    o_ref: (TR, L) float32 tile.  Folded element (r, k) corresponds to
        sequence position p = r*fold + k // d_model, feature col k % d_model.
    """
    tr, _ = o_ref.shape
    row0 = pl.program_id(0) * tr                       # global folded-row offset

    inv_freq_scaled = const_ref[0:1, :]                # (1, L)
    col_bias = const_ref[1:2, :]                       # (1, L)
    cos_mask = const_ref[2:3, :]                       # (1, L)

    # Row-only global folded-row index, (TR, 1); broadcasts against (1, L).
    r = (jax.lax.broadcasted_iota(jnp.int32, (tr, 1), 0) + row0).astype(jnp.float32)
    angle = r * inv_freq_scaled + col_bias             # one mul + one add (VPU)
    o_ref[...] = jnp.where(cos_mask != 0.0, jnp.cos(angle), jnp.sin(angle))


def _choose_fold(d_model, lane_cap=4096):
    """Fold positions into one lane row so the last dim is a multiple of 128."""
    if d_model % 128 == 0:
        return 1
    lane = d_model * 128 // math.gcd(d_model, 128)     # lcm(d_model, 128)
    if lane <= lane_cap:
        return lane // d_model
    return 1  # rare huge non-128-multiple d_model: accept masked partial stores


def _choose_tile_rows(r_total, lane, target_bytes=4 * 1024 * 1024):
    """Rows per output block: multiple of 8, ~4 MiB blocks, >=2 grid steps when possible."""
    rows_from_bytes = max(8, (target_bytes // (lane * 4)) // 8 * 8)
    rows_full = ((r_total + 7) // 8) * 8               # everything in one tile
    if rows_full > 8:
        # Cap so the grid has at least 2 steps: v7x can shard the parallel axis
        # across its two TensorCores; harmless on v5e/v6e.
        rows_half = ((pl.cdiv(r_total, 2) + 7) // 8) * 8
    else:
        rows_half = rows_full
    return min(rows_from_bytes, rows_half)


def _build_column_constants(d_model, fold):
    """Host-side (numpy, f32 like torch) column constants, shape (3, fold*d_model)."""
    lane = fold * d_model
    k = np.arange(lane)
    col = k % d_model
    sub = (k // d_model).astype(np.float32)            # position offset within fold
    div_term = np.exp(
        np.arange(0, d_model, 2, dtype=np.float32) * (-np.log(10000.0) / d_model)
    ).astype(np.float32)
    inv_freq = div_term[col // 2].astype(np.float32)   # shared sin/cos frequency
    inv_freq_scaled = (inv_freq * np.float32(fold)).astype(np.float32)
    col_bias = (sub * inv_freq).astype(np.float32)
    cos_mask = (col % 2).astype(np.float32)
    return np.stack([inv_freq_scaled, col_bias, cos_mask], axis=0)


def build_pe_table(d_model, max_len):
    """Build the full (1, max_len, d_model) float32 table with one pallas_call."""
    assert d_model % 2 == 0, "d_model must be even (as in the reference module)"

    fold = _choose_fold(d_model)
    lane = fold * d_model
    r_total = pl.cdiv(max_len, fold)                   # folded rows needed
    tile_rows = _choose_tile_rows(r_total, lane)
    grid_steps = pl.cdiv(r_total, tile_rows)
    r_pad = grid_steps * tile_rows                     # padded rows (discarded below)

    consts = jnp.asarray(_build_column_constants(d_model, fold))  # (3, lane)

    out2d = pl.pallas_call(
        _pe_kernel,
        out_shape=jax.ShapeDtypeStruct((r_pad, lane), jnp.float32),
        grid=(grid_steps,),
        in_specs=[pl.BlockSpec((3, lane), lambda i: (0, 0))],     # resident constants
        out_specs=pl.BlockSpec((tile_rows, lane), lambda i: (i, 0)),
        compiler_params=pltpu.CompilerParams(
            dimension_semantics=("parallel",),
        ),
    )(consts)

    # Free row-major relabeling of the folded layout back to (positions, d_model),
    # then drop the rows that only existed for fold / 8-row tile padding.
    return out2d.reshape(r_pad * fold, d_model)[:max_len].reshape(1, max_len, d_model)


class PositionalEncoding:
    """Pallas equivalent of the PyTorch module.

    The sinusoidal table is built once at max_len (it is input-independent);
    forward is a zero-cost slice, exactly matching `self.pe[:, :x.size(1)]`.
    """

    def __init__(self, d_model, max_len):
        self.d_model = d_model
        self.max_len = max_len
        self.pe = build_pe_table(d_model, max_len)     # (1, max_len, d_model) f32

    def __call__(self, x):
        seq_len = x.shape[1]
        assert seq_len <= self.max_len, "sequence length exceeds max_len"
        return self.pe[:, :seq_len, :]


def _reference_pe(d_model, max_len):
    pe = np.zeros((max_len, d_model), dtype=np.float32)
    position = np.arange(0, max_len, dtype=np.float32)[:, None]
    div_term = np.exp(
        np.arange(0, d_model, 2, dtype=np.float32) * (-np.log(10000.0) / d_model)
    )
    pe[:, 0::2] = np.sin(position * div_term)
    pe[:, 1::2] = np.cos(position * div_term)
    return pe[None, :, :]


if __name__ == "__main__":
    d_model = 32
    max_len = 64
    batch, seq_len = 2, 8

    key = jax.random.PRNGKey(0)
    # x values are irrelevant to the output; only the static seq_len matters,
    # exactly as in the PyTorch forward.
    x = jax.random.normal(key, (batch, seq_len, d_model), dtype=jnp.float32)

    mod = PositionalEncoding(d_model, max_len)
    out = mod(x)
    out = jax.block_until_ready(out)

    ref_full = _reference_pe(d_model, max_len)
    # Full table: slightly looser atol for f32 rounding in the FMA-shaped angle
    # accumulation at large positions (explicit cos keeps it close).
    np.testing.assert_allclose(np.asarray(mod.pe), ref_full, rtol=1e-5, atol=1e-4)
    # Forward output at the test seq_len: strict tolerance.
    np.testing.assert_allclose(np.asarray(out), ref_full[:, :seq_len], rtol=1e-5, atol=1e-5)
    assert out.shape == (1, seq_len, d_model)
    assert out.dtype == jnp.float32

    print("KERNEL_OK")
</pallas_src>

<mosaic_0001>
module attributes {stable_mosaic.version = 11 : i64} {
  func.func @_pe_kernel(%arg0: i32, %arg1: memref<3x128xf32, #tpu.memory_space<vmem>>, %arg2: memref<8x128xf32, #tpu.memory_space<vmem>>) attributes {dimension_semantics = [#tpu.dimension_semantics<parallel>], iteration_bounds = array<i64: 2>, scalar_prefetch = 0 : i64, scratch_operands = 0 : i64, tpu.core_type = #tpu.core_type<tc>, window_params = [{pipeline_mode = #tpu.pipeline_mode<synchronous>, transform_indices = @transform_0, window_bounds = array<i64: 3, 128>}, {transform_indices = @transform_1, window_bounds = array<i64: 8, 128>}]} {
    %c8_i32 = arith.constant 8 : i32
    %0 = arith.muli %arg0, %c8_i32 : i32
    %c0 = arith.constant 0 : index
    %c0_0 = arith.constant 0 : index
    %1 = vector.load %arg1[%c0, %c0_0] : memref<3x128xf32, #tpu.memory_space<vmem>>, vector<1x128xf32>
    %c1 = arith.constant 1 : index
    %c0_1 = arith.constant 0 : index
    %2 = vector.load %arg1[%c1, %c0_1] : memref<3x128xf32, #tpu.memory_space<vmem>>, vector<1x128xf32>
    %c2 = arith.constant 2 : index
    %c0_2 = arith.constant 0 : index
    %3 = vector.load %arg1[%c2, %c0_2] : memref<3x128xf32, #tpu.memory_space<vmem>>, vector<1x128xf32>
    %4 = tpu.iota {dimensions = array<i32: 0>} : vector<8x1xi32>
    %5 = vector.broadcast %0 : i32 to vector<8x1xi32>
    %6 = arith.addi %4, %5 : vector<8x1xi32>
    %7 = arith.sitofp %6 : vector<8x1xi32> to vector<8x1xf32>
    %8 = vector.broadcast %7 : vector<8x1xf32> to vector<8x128xf32>
    %9 = vector.broadcast %1 : vector<1x128xf32> to vector<8x128xf32>
    %10 = arith.mulf %8, %9 : vector<8x128xf32>
    %11 = vector.broadcast %2 : vector<1x128xf32> to vector<8x128xf32>
    %12 = arith.addf %10, %11 : vector<8x128xf32>
    %cst = arith.constant 0.000000e+00 : f32
    %13 = vector.broadcast %cst : f32 to vector<1x128xf32>
    %14 = arith.cmpf one, %3, %13 : vector<1x128xf32>
    %15 = math.cos %12 : vector<8x128xf32>
    %16 = math.sin %12 : vector<8x128xf32>
    %17 = vector.shape_cast %14 : vector<1x128xi1> to vector<1x128xi1>
    %18 = vector.broadcast %17 : vector<1x128xi1> to vector<8x128xi1>
    %19 = arith.select %18, %15, %16 : vector<8x128xi1>, vector<8x128xf32>
    %c0_3 = arith.constant 0 : index
    %c0_4 = arith.constant 0 : index
    %20 = vector.load %arg2[%c0_3, %c0_4] : memref<8x128xf32, #tpu.memory_space<vmem>>, vector<8x128xf32>
    tpu.vector_store %arg2[%c0_3, %c0_4], %19 {strides = array<i32>} : memref<8x128xf32, #tpu.memory_space<vmem>>, vector<8x128xf32>,
    return
  }
  func.func @transform_0(%arg0: i32) -> (i32, i32) {
    %c0_i32 = arith.constant 0 : i32
    %c0_i32_0 = arith.constant 0 : i32
    %c0_i32_1 = arith.constant 0 : i32
    return %c0_i32, %c0_i32_0 : i32, i32
  }
  func.func @transform_1(%arg0: i32) -> (i32, i32) {
    %c0_i32 = arith.constant 0 : i32
    %c0_i32_0 = arith.constant 0 : i32
    return %arg0, %c0_i32 : i32, i32
  }
}

</mosaic_0001>

<bundles_post_ra>
// kernel: tpu_custom_call.1
= control target key start
LH: loop header
LB: loop body
LE: loop exit
PB: predicated region body
PF: predicated region fallthrough
CT: control target
= control target key end

     0   :  { %6 = vsyncpa [#allocation3], 0  ;;  %s780_s0 = inlined_call_operand.hbm [shape: f32[3,128], index: 0, kind: input, shape index: {}]   ;;  %s781_s1 = inlined_call_operand.hbm [shape: f32[16,128], index: 1, kind: output, shape index: {}]  }
   0x1   :  { %7 = vsyncpa [#allocation4], 0 }
   0x2   :  { %9 = vsyncpa [#allocation4 + $0x1], 0  ;;  %s617_s6 = smov 0   ;;  %s619_s7 = smov 0  }
   0x3   :  { %s621_s8 = smov 0   ;;  %s623_s9 = smov 0  }
   0x4 LB: > { %s638_s10 = sadd.s32 4294967295, %s596_s9   ;;  %s416_s11 = sadd.s32 4294967294, %s596_s9   ;;  %s596_s9 = sphi %s623_s9, %s797_s9   ;;  %s592_s8 = sphi %s621_s8, %s796_s8   ;;  %s588_s7 = sphi %s619_s7, %s795_s7   ;;  %s584_s6 = sphi %s617_s6, %s794_s6  }
   0x5   : > { %s642_s12 = sadd.s32 1, %s596_s9   ;;  %s43_s13 = sadd.s32 1, %s592_s8 }
   0x6   : > { %s40_s14 = ssub.s32 %s596_s9, %s642_s12  ;;  %p53_p0 = scmp.ne.s32.totalorder %s592_s8, %s588_s7 }
   0x7   : > { %p41_p1 = scmp.eq.s32.totalorder %s40_s14, 0  ;;  %p54_p2 = scmp.eq.s32.totalorder %s638_s10, 1 }
   0x8   : > { %p59_p3 = scmp.ne.s32.totalorder %s588_s7, %s584_s6  ;;  %p60_p4 = scmp.eq.s32.totalorder %s416_s11, 1 }
   0x9   : > { %s653_s15 = scalar_select %p41_p1, %s592_s8, %s43_s13  }
   0xa   : > { %p655_p5 = por %p54_p2, %p53_p0  ;;  %p659_p6 = por %p60_p4, %p59_p3 }
   0xb   : > { %p417_p7 = scmp.ge.s32.totalorder %s596_s9, 1  ;;  %p67_p8 = scmp.lt.s32.totalorder %s596_s9, 3 }
   0xc   : > { %s785_s16 = scalar_select %p655_p5, 1, 0 }
   0xd   : > { %s786_s17 = scalar_select %p659_p6, 1, 0 }
   0xe   : > { %p782_p9 = scmp.eq.s32.totalorder %s638_s10, 0  ;;  %p666_p10 = pnand %p417_p7, %p67_p8 }
   0xf   : > { %s598_s19 = smov [#allocation2]   ;;  %s502_s24 = scalar_lea.hbm %s780_s0, 64 }
  0x10   : > { %s787_s18 = scalar_select %p666_p10, 1, 0 }
  0x11   : > { %s80_s20 = sshll.u32 %s598_s19, 4  ;;  %p447_p11 = pneg %p666_p10  ;;  %s81_s20 = int_to_ptr.vmem [resolvable:$true] %s80_s20 }
  0x12   : > { %p503_p13 = scmp.ne.s32.totalorder %s780_s0, %s502_s24  ;;  %p509_p3 = scmp.lt.u32.totalorder %s502_s24, %s780_s0 }
  0x13   : > { %p674_p12 = pnand %p782_p9, %p447_p11 }
  0x15   : > { %p504_p0 = pneg %p674_p12 }
  0x17   : > { %p505_p1 = pnand %p504_p0, %p503_p13 }
  0x19   : > { %p506_p2 = pneg %p505_p1 }
  0x1b   : > { %p511_p4 = pnand %p509_p3, %p506_p2 }
  0x1d   : > { %514 = shalt.err (!%p511_p4)
}
  0x1e   : > { %s515_s29 = scalar_lea.vmem %s81_s20, 64  ;;  %p523_p9 = scmp.lt.s32.totalorder %s81_s20, %s81_s20 }
  0x1f   : > { %p516_p7 = scmp.ne.s32.totalorder %s81_s20, %s515_s29  ;;  %p524_p6 = scmp.lt.s32.totalorder %s515_s29, %s515_s29 }
  0x21   : > { %p518_p8 = pnand %p516_p7, %p504_p0  ;;  %p525_p5 = por %p524_p6, %p523_p9 }
  0x23   : > { %p519_p11 = pneg %p518_p8 }
  0x25   : > { %p526_p10 = pnand %p525_p5, %p519_p11 }
  0x27   : > { %529 = shalt.err (!%p526_p10)
}
  0x28   : > { %450 = dma.hbm_to_vmem [thread:$0]  (!%p674_p12), %s780_s0, 64, %s81_s20, [#allocation3]  }
  0x29   : > { %p789_p13 = scmp.ne.s32.totalorder %s787_s18, 0 }
  0x2a   : > { %p790_p1 = scmp.eq.s32.totalorder (!%p789_p13), %s638_s10, 0 }
  0x2b   : > { %93 = sbr.rel (%p789_p13) target bundleno = 158 (0x9e), region = 24 }
  0x32   : > { %575 = dma.done.wait (%p790_p1), [#allocation3], 64   ;;  %p791_p0 = pmov %p790_p1 }
  0x33   : > { %s422_s3 = sshll.u32 %s638_s10, 3  ;;  %v112_v0 = vlaneseq  ;;  %v423_v5 = vld [vmem:[#allocation2] ss:$0 sm:$0xff]  ;;  %v424_v6 = vld [vmem:[#allocation2 + $0x1] ss:$0 sm:$0xff]  ;;  %s105_s4 = sand.u32 1, %s588_s7  }
  0x34   : > { %577 = vsyncadd (%p791_p0), [#allocation3], 4294967232  ;;  %v114_v1 = vstv %s422_s3  ;;  %v599_v20 = vmov 683565275   ;;  %v600_v22 = vmov 2475754826  }
  0x35   : > { %v701_v2 = vshrl.u32 %v112_v0, 7  ;;  %v601_v24 = vmov 2131351028   ;;  %v602_v26 = vmov 2102212464   ;;  %s728_s5 = sshll.u32 %s105_s4, 3 }
  0x36   : > { %v603_v28 = vmov 920167782   ;;  %v604_v35 = vmov 1326507024   ;;  %s107_s11 = scalar_lea.vmem [#allocation5], %s728_s5  ;;  %s434_s14 = sshll.u32 %s638_s10, 7 }
  0x37   : > { %v115_v3 = vadd.s32 %v114_v1, %v701_v2  ;;  %s357_s13 = sshll.u32 %s107_s11, 4  ;;  %s738_s20 = scalar_lea.hbm %s781_s1, %s434_s14  ;;  %s733_s13 = int_to_ptr.vmem [resolvable:$true] %s357_s13 }
  0x38   : > { %s344_s10 = scalar_lea.sflag [#allocation4], %s105_s4  ;;  %s530_s21 = scalar_lea.vmem %s733_s13, 128 }
  0x39   : > { %v116_v4 = vcvt.s32.f32 %v115_v3  ;;  %p531_p5 = scmp.ne.s32.totalorder %s733_s13, %s530_s21  ;;  %p792_p6 = scmp.ne.s32.totalorder %s785_s16, 0 }
  0x3a   : > { %s606_s22 = smov [#allocation5]  }
  0x3b   : > { %v121_v7 = vmul.f32 %v423_v5, %v116_v4  ;;  %p532_p9 = pnand %p531_p5, %p792_p6  ;;  %s534_s23 = sshll.u32 %s606_s22, 4  ;;  %s535_s23 = int_to_ptr.vmem [resolvable:$false] %s534_s23 }
  0x3c   : > { %s536_s24 = scalar_lea.vmem %s535_s23, 256  ;;  %p537_p12 = scmp.lt.s32.totalorder %s733_s13, %s535_s23 }
  0x3d   : > { %v704_v8 = vadd.f32 %v424_v6, %v121_v7  ;;  %p533_p10 = pneg %p532_p9  ;;  %p538_p2 = scmp.lt.s32.totalorder %s536_s24, %s530_s21 }
  0x3f   : > { %v131_v9 = vand.u32 2139095040, %v704_v8  ;;  %v128_v11 = vand.u32 2147483647, %v704_v8  ;;  %vm130_vm7 = vcmp.lt.s32.totalorder %v704_v8, 0  ;;  %p539_p3 = por %p538_p2, %p537_p12 }
  0x41   : > { %v132_v10 = vshrl.u32 %v131_v9, 23  ;;  %v135_v14 = vand.u32 8388607, %v128_v11  ;;  %vm129_vm8 = vcmp.le.f32.partialorder %v128_v11, 0.7853982  ;;  %v605_v11 = vmov 0   ;;  %p540_p4 = pnand %p539_p3, %p533_p10 }
  0x43   : > { %v425_v12 = vadd.s32 4294967169, %v132_v10  ;;  %v136_v17 = vor.u32 8388608, %v135_v14 }
  0x45   : > { %v138_v13 = vadd.s32 1, %v425_v12  ;;  %v176_v37 = vshll.u32 %v136_v17, 8 }
  0x47   : > { %vm139_vm0 = vcmp.gt.s32.totalorder %v138_v13, 0 }
  0x48   : > { %v140_v15 = vsel %vm139_vm0, %v138_v13, 0  ;;  %vm220_vm0 = vweird.f32 %v704_v8 }
  0x49   : > { %v142_v16 = vand.u32 31, %v140_v15  ;;  %v141_v18 = vshrl.u32 %v140_v15, 5 }
  0x4b   : > { %v143_v19 = vsub.s32 32, %v142_v16  ;;  %v145_v21 = vshll.u32 %v599_v20, %v142_v16  ;;  %v148_v23 = vshll.u32 %v600_v22, %v142_v16  ;;  %v151_v25 = vshll.u32 %v601_v24, %v142_v16 }
  0x4c   : > { %v154_v27 = vshll.u32 %v602_v26, %v142_v16  ;;  %v157_v29 = vshll.u32 %v603_v28, %v142_v16  ;;  %vm160_vm1 = vcmp.lt.s32.totalorder %v141_v18, 1  ;;  %vm163_vm2 = vcmp.lt.s32.totalorder %v141_v18, 4 }
  0x4d   : > { %v144_v30 = vshrl.u32 %v599_v20, %v143_v19  ;;  %v146_v31 = vshrl.u32 %v600_v22, %v143_v19  ;;  %v149_v32 = vshrl.u32 %v601_v24, %v143_v19  ;;  %v152_v33 = vshrl.u32 %v602_v26, %v143_v19 }
  0x4e   : > { %v155_v34 = vshrl.u32 %v603_v28, %v143_v19  ;;  %v158_v36 = vshrl.u32 %v604_v35, %v143_v19  ;;  %vm161_vm3 = vcmp.lt.s32.totalorder %v141_v18, 2  ;;  %vm162_vm4 = vcmp.lt.s32.totalorder %v141_v18, 3 }
  0x4f   : > { %v147_v38 = vor.u32 %v146_v31, %v145_v21  ;;  %v150_v39 = vor.u32 %v149_v32, %v148_v23  ;;  %v153_v40 = vor.u32 %v152_v33, %v151_v25  ;;  %v338_v33 = vsub.s32 0, %v701_v2 }
  0x50   : > { %v156_v41 = vor.u32 %v155_v34, %v154_v27  ;;  %v159_v42 = vor.u32 %v158_v36, %v157_v29  ;;  %v111_v29 = vld [vmem:[#allocation2 + $0x2] sm:$0x1] }
  0x51   : > { %v164_v43 = vsel %vm160_vm1, %v144_v30, %v147_v38  ;;  %v165_v44 = vsel %vm163_vm2, %v153_v40, 2102212464  ;;  %v168_v45 = vsel %vm160_vm1, %v147_v38, %v150_v39  ;;  %v172_v46 = vsel %vm160_vm1, %v150_v39, %v153_v40 }
  0x52   : > { %v166_v47 = vsel %vm162_vm4, %v150_v39, %v165_v44  ;;  %v169_v48 = vsel %vm163_vm2, %v156_v41, 920167782  ;;  %v173_v49 = vsel %vm163_vm2, %v159_v42, 1326507024  ;;  %vm127_vm9 = vcmp.ne.f32.partialorder %v111_v29, 0.0 }
  0x53   : > { %v170_v50 = vsel %vm162_vm4, %v153_v40, %v169_v48  ;;  %v174_v51 = vsel %vm162_vm4, %v156_v41, %v173_v49  ;;  %v167_v52 = vsel %vm161_vm3, %v164_v43, %v166_v47  ;;  %v335_v34 = vsel %vm127_vm9, 1, %v605_v11 }
  0x54   : > { %v171_v53 = vsel %vm161_vm3, %v168_v45, %v170_v50  ;;  %v175_v54 = vsel %vm161_vm3, %v172_v46, %v174_v51  ;;  %v183_v59 = vmul.u32 %v176_v37, %v167_v52  ;;  %v339_v36 = vrot.slane %v335_v34, %v338_v33 }
  0x55   : > { %v710_v55 = vmul.u32.u64.low %v176_v37, %v175_v54  ;;  %v711_v56 = vmul.u32.u64.high %v176_v37, %v175_v54, %v710_v55  ;;  %v713_v57 = vmul.u32.u64.low %v176_v37, %v171_v53  ;;  %v714_v58 = vmul.u32.u64.high %v176_v37, %v171_v53, %v713_v57 }
  0x56   : > { %vm340_vm1 = vcmp.eq.s32.totalorder %v339_v36, 1 }
  0x57   : > { %vm185_vm5 = vc.u32 %v711_v56, %v713_v57  ;;  %v186_v60 = vadd.s32 1, %v714_v58  ;;  %v184_v9 = vadd.s32 %v713_v57, %v711_v56 }
  0x59   : > { %v187_v61 = vsel %vm185_vm5, %v186_v60, %v714_v58 }
  0x5a   : > { %v188_v62 = vadd.s32 %v187_v61, %v183_v59 }
  0x5c   : > { %v189_v63 = vadd.s32 536870912, %v188_v62 }
  0x5e   : > { %v190_v0 = vshrl.u32 %v189_v63, 30 }
  0x60   : > { %v191_v1 = vshll.u32 %v190_v0, 30  ;;  %v214_v22 = vsub.s32 4, %v190_v0 }
  0x62   : > { %v192_v3 = vsub.s32 %v188_v62, %v191_v1  ;;  %v215_v25 = vsel %vm130_vm7, %v214_v22, %v190_v0 }
  0x63   : > { %v217_v28 = vsel %vm129_vm8, 0, %v215_v25 }
  0x64   : > { %v194_v4 = vsub.s32 0, %v192_v3  ;;  %v324_v30 = vadd.s32 3, %v217_v28  ;;  %v221_v31 = vand.u32 3, %v217_v28 }
  0x66   : > { %v426_v5 = vmin.u32 %v194_v4, %v192_v3  ;;  %v325_v32 = vand.u32 3, %v324_v30  ;;  %vm226_vm10 = vcmp.eq.s32.totalorder %v221_v31, 2  ;;  %vm223_vm12 = vcmp.eq.s32.totalorder %v221_v31, 0 }
  0x67   : > { %vm222_vm14 = vcmp.lt.s32.totalorder %v221_v31, 2 }
  0x68   : > { %v196_v6 = vclz %v426_v5  ;;  %vm330_vm11 = vcmp.eq.s32.totalorder %v325_v32, 2  ;;  %vm327_vm13 = vcmp.eq.s32.totalorder %v325_v32, 0  ;;  %vm326_vm15 = vcmp.lt.s32.totalorder %v325_v32, 2 }
  0x6a   : > { %v427_v7 = vadd.s32 4294967294, %v196_v6 }
  0x6c   : > { %vm428_vm6 = vcmp.lt.s32.totalorder %v427_v7, 0 }
  0x6d   : > { %v199_v10 = vsel %vm428_vm6, 0, %v427_v7 }
  0x6e   : > { %v200_v12 = vsub.s32 32, %v199_v10  ;;  %v201_v13 = vshll.u32 %v192_v3, %v199_v10  ;;  %v204_v14 = vsub.s32 4294967266, %v199_v10 }
  0x70   : > { %v202_v15 = vshrl.u32 %v184_v9, %v200_v12  ;;  %v205_v16 = vadd.s32 127, %v204_v14 }
  0x72   : > { %v203_v17 = vor.u32 %v202_v15, %v201_v13  ;;  %v206_v18 = vshll.u32 %v205_v16, 23 }
  0x74   : > { %v207_v19 = vor.u32 4788187, %v206_v18  ;;  %v210_v20 = vcvt.s32.f32 %v203_v17 }
  0x76   : > { %v208_v21 = vand.u32 2147483647, %v207_v19 }
  0x78   : > { %v211_v23 = vmul.f32 %v210_v20, %v208_v21 }
  0x7a   : > { %v212_v24 = vxor.u32 2147483648, %v211_v23 }
  0x7c   : > { %v213_v26 = vsel %vm130_vm7, %v212_v24, %v211_v23 }
  0x7d   : > { %v216_v27 = vsel %vm129_vm8, %v704_v8, %v213_v26 }
  0x7e   : > { %498 = vcosq.f32 %v216_v27 }
  0x7f   : > { %500 = vsinq.f32 %v216_v27 }
  0x88   : > { %v499_v35 = vpop.eup %498 }
  0x89   : > { %v501_v37 = vpop.eup %500  ;;  %v227_v38 = vxor.u32 2147483648, %v499_v35 }
  0x8a   : > { %v224_v39 = vxor.u32 2147483648, %v501_v37 }
  0x8b   : > { %v228_v2 = vsel %vm226_vm10, %v227_v38, %v501_v37  ;;  %v332_v40 = vsel %vm330_vm11, %v227_v38, %v501_v37 }
  0x8c   : > { %v225_v41 = vsel %vm223_vm12, %v499_v35, %v224_v39  ;;  %v329_v42 = vsel %vm327_vm13, %v499_v35, %v224_v39 }
  0x8d   : > { %v229_v43 = vsel %vm222_vm14, %v225_v41, %v228_v2  ;;  %v333_v44 = vsel %vm326_vm15, %v329_v42, %v332_v40 }
  0x8e   : > { %v230_v45 = vsel %vm220_vm0, nan, %v229_v43  ;;  %v334_v46 = vsel %vm220_vm0, nan, %v333_v44 }
  0x8f   : > { %v341_v8 = vsel %vm340_vm1, %v230_v45, %v334_v46 }
  0x90   : > { %342 = vst [vmem:[%s107_s11] sm:$0xff] %v341_v8 }
  0x91   : > { %543 = shalt.err (!%p540_p4)
}
  0x92   : > { %s544_s25 = scalar_lea.hbm %s738_s20, 128  ;;  %s548_s28 = scalar_lea.hbm %s781_s1, 256 }
  0x93   : > { %p545_p7 = scmp.ne.s32.totalorder %s738_s20, %s544_s25  ;;  %p549_p13 = scmp.lt.u32.totalorder %s738_s20, %s781_s1 }
  0x94   : > { %p550_p1 = scmp.lt.u32.totalorder %s548_s28, %s544_s25  ;;  %p552_p5 = scmp.lt.u32.totalorder %s544_s25, %s738_s20 }
  0x95   : > { %p546_p8 = pnand %p545_p7, %p792_p6 }
  0x96   : > { %p551_p0 = por %p550_p1, %p549_p13 }
  0x97   : > { %p547_p11 = pneg %p546_p8 }
  0x98   : > { %p553_p9 = por %p552_p5, %p551_p0 }
  0x9a   : > { %p554_p10 = pnand %p553_p9, %p547_p11 }
  0x9c   : > { %557 = shalt.err (!%p554_p10)
}
  0x9d   : > { %445 = dma.vmem_to_hbm [thread:$0]  (%p792_p6), %s733_s13, 128, %s738_s20, %s344_s10  }
  0x9e PF: > { %p457_p12 = scmp.ge.s32.totalorder %s596_s9, 2  ;;  %s369_s2 = sand.u32 1, %s584_s6  }
  0x9f   : > { %p793_p2 = scmp.ne.s32.totalorder %s786_s17, 0  ;;  %s370_s3 = scalar_lea.sflag [#allocation4], %s369_s2 }
  0xa1   : > { %p452_p3 = pnand %p457_p12, %p793_p2 }
  0xa3   : > { %579 = dma.done.wait (!%p452_p3), %s370_s3, 128  }
  0xa4   : > { %581 = vsyncadd (!%p452_p3), %s370_s3, 4294967168  ;;  %p12_p4 = scmp.ge.s32.totalorder %s642_s12, 4   ;;  %s794_s6 = smov %s588_s7 }
  0xa5   : > { %s795_s7 = smov %s592_s8  ;;  %s796_s8 = smov %s653_s15 }
  0xa6   : > { %s797_s9 = smov %s642_s12  ;;  %14 = sbr.rel (!%p12_p4) target bundleno = 4 (0x4), region = 61 }
  0xad   :  { %375 = vsyncpa [#allocation3], 1 }
  0xae   :  { %377 = vsyncpa [#allocation3 + $0x1], 1 }
  0xaf   :  { %378 = vsyncpa [#allocation4], 1 }
  0xb0   :  { %380 = vsyncpa [#allocation4 + $0x1], 1 }

</bundles_post_ra>
